<compile_context>
chip_gen: v6e
topology: v6e:2x2x1
jax: 0.10.0
libtpu: 0.0.40
codegen_flags: <defaults>
</compile_context>

<pallas_src>
import math

import jax
import jax.numpy as jnp
from jax.experimental import pallas as pl
from jax.experimental.pallas import tpu as pltpu

C = 10          # "x" in the PyTorch module: out_channels of both convs
LANES = 128     # TPU lane width
B_TILE = 8      # batch rows per grid step (f32 sublane multiple)

# Row layout of the single packed parameter buffer (P_ROWS, 128):
#   row  P_W1        : lane c = conv1.weight[c, 0, 0]          (c < C, else 0)
#   row  P_B1        : lane c = conv1.bias[c]
#   row  P_B2        : lane o = conv2.bias[o]
#   rows [P_W2, +128): row c, lane o = conv2.weight[o, c, 0]   (all-zero padding
#                      rows/lanes make the 1000-clamped padding channels inert)
P_W1, P_B1, P_B2, P_W2 = 0, 1, 2, 8
P_ROWS = P_W2 + LANES            # 136


def model_kernel(x_ref, params_ref, o_ref):
    # x_ref     : (B_TILE, 1)    VMEM -- one scalar input per sample
    # params_ref: (P_ROWS, 128)  VMEM -- packed parameters (layout above)
    # o_ref     : (B_TILE, 128)  VMEM -- per-sample softmax (valid lanes [0, C))
    w1 = params_ref[P_W1:P_W1 + 1, :]          # (1, 128)
    b1 = params_ref[P_B1:P_B1 + 1, :]          # (1, 128)
    b2 = params_ref[P_B2:P_B2 + 1, :]          # (1, 128)
    w2t = params_ref[P_W2:P_W2 + LANES, :]     # (128, 128), [c, o]

    # conv1 (kernel size 1, in_channels 1): v1[b, c] = x[b] * w1[c] + b1[c]
    v1 = x_ref[...] * w1 + b1                  # (B_TILE, 128)

    # clamp(min=1000, max=10000).  Padding lanes become 1000 but hit all-zero
    # rows of w2t below, so they contribute nothing to conv2.
    v2 = jnp.clip(v1, 1000.0, 10000.0)

    # conv2 (kernel size 1): v3[b, o] = sum_c v2[b, c] * w2[o, c] + b2[o]
    # MXU contraction (batch >= 8 rows of LHS).  fp32 contract precision:
    # activations are O(1e3-1e4), so a single-pass bf16 contraction would
    # shift the logits by several units and corrupt the softmax.
    v3 = jnp.dot(v2, w2t, preferred_element_type=jnp.float32,
                 precision=jax.lax.Precision.HIGHEST) + b2

    # relu.  Padding lanes of v3 are exactly 0, so v4 padding lanes are 0.
    v4 = jnp.maximum(v3, 0.0)

    # Softmax over the C valid lanes.  All lanes of v4 are >= 0 and padding
    # lanes are 0, so the row max over all 128 lanes equals the max over the
    # valid lanes; only the exp needs masking (single mask, per review).
    lane = jax.lax.broadcasted_iota(jnp.int32, v4.shape, 1)
    m = jnp.max(v4, axis=-1, keepdims=True)
    e = jnp.where(lane < C, jnp.exp(v4 - m), 0.0)
    denom = jnp.sum(e, axis=-1, keepdims=True)
    o_ref[...] = e / denom                     # exact divide (launch-bound kernel)


def prepare_params(w1, b1, w2, b2):
    """One-time packing of conv1/conv2 parameters (hoisted out of hot path).

    w1: (C,1,1), b1: (C,), w2: (C,C,1), b2: (C,)  ->  (P_ROWS, 128) f32.
    """
    p = jnp.zeros((P_ROWS, LANES), jnp.float32)
    p = p.at[P_W1, :C].set(w1.reshape(C).astype(jnp.float32))
    p = p.at[P_B1, :C].set(b1.reshape(C).astype(jnp.float32))
    p = p.at[P_B2, :C].set(b2.reshape(C).astype(jnp.float32))
    p = p.at[P_W2:P_W2 + C, :C].set(w2.reshape(C, C).T.astype(jnp.float32))
    return p


@jax.jit
def model_forward(x1, packed_params):
    """x1: (B, 1, 1), packed_params: (P_ROWS, 128)  ->  v5: (B, C)."""
    B = x1.shape[0]
    x_col = x1.reshape(B, 1).astype(jnp.float32)
    b_pad = ((B + B_TILE - 1) // B_TILE) * B_TILE
    if b_pad != B:                              # static: resolved at trace time
        x_col = jnp.pad(x_col, ((0, b_pad - B), (0, 0)))
    out = pl.pallas_call(
        model_kernel,
        out_shape=jax.ShapeDtypeStruct((b_pad, LANES), jnp.float32),
        grid=(b_pad // B_TILE,),
        in_specs=[
            pl.BlockSpec((B_TILE, 1), lambda i: (i, 0)),        # per-block inputs
            pl.BlockSpec((P_ROWS, LANES), lambda i: (0, 0)),    # params, resident
        ],
        out_specs=pl.BlockSpec((B_TILE, LANES), lambda i: (i, 0)),  # lane-dense
        compiler_params=pltpu.CompilerParams(
            dimension_semantics=("parallel",)),  # v7x: both TCs split the batch
    )(x_col, packed_params)
    return out[:B, :C]


def _reference(x1, w1, b1, w2, b2):
    """Pure-JAX reference of the (repaired) forward pass, exact f32 math."""
    B = x1.shape[0]
    s = x1.reshape(B, 1)
    v1 = s * w1.reshape(1, C) + b1.reshape(1, C)                     # (B, C)
    v2 = jnp.clip(v1, 1000.0, 10000.0)
    v3 = jnp.sum(v2[:, None, :] * w2.reshape(C, C)[None, :, :], axis=-1) \
        + b2.reshape(1, C)                                           # (B, C)
    v4 = jnp.maximum(v3, 0.0)
    return jax.nn.softmax(v4, axis=-1)


if __name__ == "__main__":
    key = jax.random.PRNGKey(0)
    kx, k1, k2, k3, k4 = jax.random.split(key, 5)

    # Deterministic parameter init mimicking PyTorch Conv1d defaults
    # (uniform(-1/sqrt(fan_in), 1/sqrt(fan_in))).
    bound1 = 1.0 / math.sqrt(1 * 1)      # conv1: fan_in = in_channels(1) * k(1)
    bound2 = 1.0 / math.sqrt(C * 1)      # conv2: fan_in = in_channels(C) * k(1)
    w1 = jax.random.uniform(k1, (C, 1, 1), jnp.float32, -bound1, bound1)
    b1 = jax.random.uniform(k2, (C,), jnp.float32, -bound1, bound1)
    w2 = jax.random.uniform(k3, (C, C, 1), jnp.float32, -bound2, bound2)
    b2 = jax.random.uniform(k4, (C,), jnp.float32, -bound2, bound2)

    # One-time parameter packing (init-time, not per-call).
    packed = jax.block_until_ready(prepare_params(w1, b1, w2, b2))

    # Batched call: 16 samples -> 2 batch blocks (exercises the parallel grid).
    B = 16
    x1 = jax.random.normal(kx, (B, 1, 1), jnp.float32)
    out = jax.block_until_ready(model_forward(x1, packed))
    ref = _reference(x1, w1, b1, w2, b2)
    assert out.shape == (B, C)
    # Tolerance covers MXU fp32-contract rounding on O(1e3) logits.
    assert jnp.allclose(out, ref, atol=1e-3, rtol=1e-3), (out, ref)

    # Original single-sample contract (1, 1, 1) still works (padded to a tile).
    out1 = jax.block_until_ready(model_forward(x1[:1], packed))
    ref1 = _reference(x1[:1], w1, b1, w2, b2)
    assert out1.shape == (1, C)
    assert jnp.allclose(out1, ref1, atol=1e-3, rtol=1e-3), (out1, ref1)

    print("KERNEL_OK")
</pallas_src>

<mosaic_0001>
module attributes {stable_mosaic.version = 11 : i64} {
  func.func @model_kernel(%arg0: i32, %arg1: memref<8x1xf32, #tpu.memory_space<vmem>>, %arg2: memref<136x128xf32, #tpu.memory_space<vmem>>, %arg3: memref<8x128xf32, #tpu.memory_space<vmem>>) attributes {dimension_semantics = [#tpu.dimension_semantics<parallel>], iteration_bounds = array<i64: 2>, scalar_prefetch = 0 : i64, scratch_operands = 0 : i64, tpu.core_type = #tpu.core_type<tc>, window_params = [{transform_indices = @transform_0, window_bounds = array<i64: 8, 1>}, {pipeline_mode = #tpu.pipeline_mode<synchronous>, transform_indices = @transform_1, window_bounds = array<i64: 136, 128>}, {transform_indices = @transform_2, window_bounds = array<i64: 8, 128>}]} {
    %c0 = arith.constant 0 : index
    %c0_0 = arith.constant 0 : index
    %0 = vector.load %arg2[%c0, %c0_0] : memref<136x128xf32, #tpu.memory_space<vmem>>, vector<1x128xf32>
    %c1 = arith.constant 1 : index
    %c0_1 = arith.constant 0 : index
    %1 = vector.load %arg2[%c1, %c0_1] : memref<136x128xf32, #tpu.memory_space<vmem>>, vector<1x128xf32>
    %c2 = arith.constant 2 : index
    %c0_2 = arith.constant 0 : index
    %2 = vector.load %arg2[%c2, %c0_2] : memref<136x128xf32, #tpu.memory_space<vmem>>, vector<1x128xf32>
    %c8 = arith.constant 8 : index
    %c0_3 = arith.constant 0 : index
    %3 = vector.load %arg2[%c8, %c0_3] : memref<136x128xf32, #tpu.memory_space<vmem>>, vector<128x128xf32>
    %c0_4 = arith.constant 0 : index
    %c0_5 = arith.constant 0 : index
    %4 = vector.load %arg1[%c0_4, %c0_5] : memref<8x1xf32, #tpu.memory_space<vmem>>, vector<8x1xf32>
    %5 = vector.broadcast %4 : vector<8x1xf32> to vector<8x128xf32>
    %6 = vector.broadcast %0 : vector<1x128xf32> to vector<8x128xf32>
    %7 = arith.mulf %5, %6 : vector<8x128xf32>
    %8 = vector.broadcast %1 : vector<1x128xf32> to vector<8x128xf32>
    %9 = arith.addf %7, %8 : vector<8x128xf32>
    %cst = arith.constant 1.000000e+03 : f32
    %cst_6 = arith.constant 1.000000e+04 : f32
    %10 = vector.broadcast %cst : f32 to vector<8x128xf32>
    %11 = arith.maximumf %10, %9 : vector<8x128xf32>
    %12 = vector.broadcast %cst_6 : f32 to vector<8x128xf32>
    %13 = arith.minimumf %12, %11 : vector<8x128xf32>
    %cst_7 = arith.constant dense<0.000000e+00> : vector<8x128xf32>
    %14 = tpu.matmul %13, %3, %cst_7 {dimension_numbers = #tpu.dot_dimension_numbers<[1], [0], [0], [1], [0, 0, 1, 1], [], []>, precision = #tpu.contract_precision<fp32>} : vector<8x128xf32>, vector<128x128xf32>, vector<8x128xf32> -> vector<8x128xf32>
    %15 = vector.broadcast %2 : vector<1x128xf32> to vector<8x128xf32>
    %16 = arith.addf %14, %15 : vector<8x128xf32>
    %cst_8 = arith.constant 0.000000e+00 : f32
    %17 = vector.broadcast %cst_8 : f32 to vector<8x128xf32>
    %18 = arith.maximumf %16, %17 : vector<8x128xf32>
    %19 = tpu.iota {dimensions = array<i32: 1>} : vector<8x128xi32>
    %cst_9 = arith.constant dense<0xFF800000> : vector<8xf32>
    %20 = vector.multi_reduction <maximumf>, %18, %cst_9 [1] : vector<8x128xf32> to vector<8xf32>
    %21 = vector.shape_cast %20 : vector<8xf32> to vector<8x1xf32>
    %c10_i32 = arith.constant 10 : i32
    %22 = vector.broadcast %c10_i32 : i32 to vector<8x128xi32>
    %23 = arith.cmpi slt, %19, %22 : vector<8x128xi32>
    %24 = vector.broadcast %21 : vector<8x1xf32> to vector<8x128xf32>
    %25 = arith.subf %18, %24 : vector<8x128xf32>
    %26 = math.exp %25 : vector<8x128xf32>
    %cst_10 = arith.constant 0.000000e+00 : f32
    %27 = vector.broadcast %cst_10 : f32 to vector<8x128xf32>
    %28 = arith.select %23, %26, %27 : vector<8x128xi1>, vector<8x128xf32>
    %cst_11 = arith.constant dense<0.000000e+00> : vector<8xf32>
    %29 = vector.multi_reduction <add>, %28, %cst_11 [1] : vector<8x128xf32> to vector<8xf32>
    %30 = vector.shape_cast %29 : vector<8xf32> to vector<8x1xf32>
    %31 = vector.broadcast %30 : vector<8x1xf32> to vector<8x128xf32>
    %32 = arith.divf %28, %31 : vector<8x128xf32>
    %c0_12 = arith.constant 0 : index
    %c0_13 = arith.constant 0 : index
    %33 = vector.load %arg3[%c0_12, %c0_13] : memref<8x128xf32, #tpu.memory_space<vmem>>, vector<8x128xf32>
    tpu.vector_store %arg3[%c0_12, %c0_13], %32 {strides = array<i32>} : memref<8x128xf32, #tpu.memory_space<vmem>>, vector<8x128xf32>,
    return
  }
  func.func @transform_0(%arg0: i32) -> (i32, i32) {
    %c0_i32 = arith.constant 0 : i32
    %c0_i32_0 = arith.constant 0 : i32
    return %arg0, %c0_i32 : i32, i32
  }
  func.func @transform_1(%arg0: i32) -> (i32, i32) {
    %c0_i32 = arith.constant 0 : i32
    %c0_i32_0 = arith.constant 0 : i32
    %c0_i32_1 = arith.constant 0 : i32
    return %c0_i32, %c0_i32_0 : i32, i32
  }
  func.func @transform_2(%arg0: i32) -> (i32, i32) {
    %c0_i32 = arith.constant 0 : i32
    %c0_i32_0 = arith.constant 0 : i32
    return %arg0, %c0_i32 : i32, i32
  }
}

</mosaic_0001>

<bundles_post_ra>
// kernel: model_forward.1
= control target key start
LH: loop header
LB: loop body
LE: loop exit
PB: predicated region body
PF: predicated region fallthrough
CT: control target
= control target key end

     0   :  { %7 = vsyncpa [#allocation3], 0  ;;  %s1901_s0 = inlined_call_operand.vmem [shape: f32[16,1], index: 0, kind: input, shape index: {}]   ;;  %s1902_s1 = inlined_call_operand.hbm [shape: f32[136,128], index: 1, kind: input, shape index: {}]   ;;  %s1903_s2 = inlined_call_operand.hbm [shape: f32[16,128], index: 2, kind: output, shape index: {}]  }
   0x1   :  { %8 = vsyncpa [#allocation4], 0 }
   0x2   :  { %10 = vsyncpa [#allocation4 + $0x1], 0  ;;  %s1437_s9 = smov 0   ;;  %s1439_s10 = smov 0  }
   0x3   :  { %s1441_s11 = smov 0   ;;  %s1443_s12 = smov 0  }
   0x4 LB: > { %s1458_s13 = sadd.s32 4294967295, %s1413_s12   ;;  %s936_s14 = sadd.s32 4294967294, %s1413_s12   ;;  %s1413_s12 = sphi %s1443_s12, %s1911_s12   ;;  %s1409_s11 = sphi %s1441_s11, %s1910_s11   ;;  %s1405_s10 = sphi %s1439_s10, %s1909_s10   ;;  %s1401_s9 = sphi %s1437_s9, %s1908_s9  }
   0x5   : > { %s1462_s15 = sadd.s32 1, %s1413_s12   ;;  %s70_s16 = sadd.s32 1, %s1409_s11 }
   0x6   : > { %s67_s17 = ssub.s32 %s1413_s12, %s1462_s15  ;;  %p80_p0 = scmp.ne.s32.totalorder %s1409_s11, %s1405_s10 }
   0x7   : > { %p68_p1 = scmp.eq.s32.totalorder %s67_s17, 0  ;;  %p81_p2 = scmp.eq.s32.totalorder %s1458_s13, 1 }
   0x8   : > { %p86_p3 = scmp.ne.s32.totalorder %s1405_s10, %s1401_s9  ;;  %p87_p4 = scmp.eq.s32.totalorder %s936_s14, 1 }
   0x9   : > { %s1473_s18 = scalar_select %p68_p1, %s1409_s11, %s70_s16  }
   0xa   : > { %p1475_p5 = por %p81_p2, %p80_p0  ;;  %p1479_p6 = por %p87_p4, %p86_p3 }
   0xb   : > { %p937_p7 = scmp.ge.s32.totalorder %s1413_s12, 1  ;;  %p94_p8 = scmp.lt.s32.totalorder %s1413_s12, 3 }
   0xc   : > { %s1905_s20 = scalar_select %p1479_p6, 1, 0 }
   0xd   : > { %p1277_p9 = scmp.eq.s32.totalorder %s1458_s13, 0  ;;  %p1486_p10 = pnand %p937_p7, %p94_p8 }
   0xe   : > { %s1415_s22 = smov [#allocation2]  }
   0xf   : > { %s106_s23 = sshll.u32 %s1415_s22, 4  ;;  %p1269_p11 = pneg %p1486_p10  ;;  %s107_s23 = int_to_ptr.vmem [resolvable:$true] %s106_s23 }
  0x10   : > { %s1334_s24 = scalar_lea.vmem %s107_s23, 2176  ;;  %p1342_p3 = scmp.lt.s32.totalorder %s107_s23, %s107_s23 }
  0x11   : > { %p1270_p12 = pnand %p1277_p9, %p1269_p11  ;;  %p1335_p0 = scmp.ne.s32.totalorder %s107_s23, %s1334_s24 }
  0x12   : > { %p1343_p4 = scmp.lt.s32.totalorder %s1334_s24, %s1334_s24 }
  0x13   : > { %p1325_p13 = pneg %p1270_p12 }
  0x14   : > { %p1344_p6 = por %p1343_p4, %p1342_p3 }
  0x15   : > { %p1337_p1 = pnand %p1335_p0, %p1325_p13 }
  0x17   : > { %p1338_p2 = pneg %p1337_p1 }
  0x19   : > { %p1345_p7 = pnand %p1344_p6, %p1338_p2 }
  0x1b   : > { %1348 = shalt.err (!%p1345_p7)
}
  0x1c   : > { %s1416_s25 = smov 128   ;;  %s1417_s26 = smov 8  }
  0x1d   : > { %1272 = dma.hbm_to_vmem [thread:$0]  (!%p1270_p12), %s1902_s1, 2176, %s107_s23, [#allocation3], %s1416_s25, %s1416_s25, %s1417_s26  }
  0x1e   : > { %129 = sbr.rel (%p1486_p10) target bundleno = 774 (0x306), region = 28 }
  0x23   : > { %1392 = dma.done.wait (%p1277_p9), [#allocation3], 2176  }
  0x24   : > { %1394 = vsyncadd (%p1277_p9), [#allocation3], 4294965120  ;;  %p150_p8 = scmp.lt.s32.totalorder %s1458_s13, 1  ;;  %v1418_v0 = vmov 0   ;;  %v1419_v1 = vmov 0.0   ;;  %v172_v3 = vld [vmem:[#allocation2 + $0x80] sm:$0xff] }
  0x25   : > { %1318 = vset.pattern.permute.xlu0 %v1418_v0  ;;  %1088 = vmatprep.subr.mxu1 %v1419_v1  ;;  %v171_v4 = vld [vmem:[#allocation2 + $0x78] sm:$0xff]  ;;  %v1510_v5 = vand.u32 4294901760, %v172_v3  ;;  %v170_v7 = vld [vmem:[#allocation2 + $0x70] sm:$0xff]  ;;  %v169_v8 = vld [vmem:[#allocation2 + $0x68] sm:$0xff]  ;;  %vm1420_vm0 = vmmov 0   ;;  %s147_s6 = sand.u32 1, %s1405_s10  }
  0x26   : > { %s151_s29 = scalar_select %p150_p8, %s1458_s13, 1  ;;  %1053 = vmatprep.subr.mxu0 %v1419_v1  ;;  %v1512_v6 = vand.u32 4294901760, %v171_v4  ;;  %v168_v9 = vld [vmem:[#allocation2 + $0x60] sm:$0xff]  ;;  %v1514_v10 = vand.u32 4294901760, %v170_v7  ;;  %v1516_v11 = vand.u32 4294901760, %v169_v8  ;;  %v167_v13 = vld [vmem:[#allocation2 + $0x58] sm:$0xff]  ;;  %1120 = vmatprep.mubr.msk.f32.mxu1 %vm1420_vm0, %v1419_v1 }
  0x27   : > { %v1518_v12 = vand.u32 4294901760, %v168_v9  ;;  %v166_v14 = vld [vmem:[#allocation2 + $0x50] sm:$0xff]  ;;  %v165_v15 = vld [vmem:[#allocation2 + $0x48] sm:$0xff]  ;;  %v1521_v16 = vsub.f32 %v172_v3, %v1510_v5  ;;  %1054 = vmatpush3.msra.mxu0 %v1510_v5  ;;  %v1527_v18 = vand.u32 4294901760, %v167_v13  ;;  %v164_v36 = vld [vmem:[#allocation2 + $0x40] sm:$0xff]  ;;  %1085 = vmatprep.mubr.msk.f32.mxu0 %vm1420_vm0, %v1419_v1  ;;  %s942_s7 = sshll.u32 %s147_s6, 3 }
  0x28   : > { %s943_s30 = sshll.u32 %s151_s29, 3  ;;  %v1524_v17 = vsub.f32 %v171_v4, %v1512_v6  ;;  %v1529_v19 = vand.u32 4294901760, %v166_v14  ;;  %v1532_v20 = vsub.f32 %v170_v7, %v1514_v10  ;;  %v1535_v21 = vsub.f32 %v169_v8, %v1516_v11  ;;  %1055 = vmatprep.subr.mxu0 %v1419_v1  ;;  %v163_v37 = vld [vmem:[#allocation2 + $0x38] sm:$0xff]  ;;  %v162_v41 = vld [vmem:[#allocation2 + $0x30] sm:$0xff]  ;;  %v161_v43 = vld [vmem:[#allocation2 + $0x28] sm:$0xff]  ;;  %s948_s8 = sshll.u32 %s1458_s13, 7 }
  0x29   : > { %s153_s5 = scalar_lea.vmem %s1901_s0, %s943_s30  ;;  %v1538_v22 = vsub.f32 %v168_v9, %v1518_v12  ;;  %v1541_v23 = vand.u32 4294901760, %v165_v15  ;;  %v289_v24 = vand.u32 4294901760, %v1521_v16  ;;  %1056 = vmatpush3.msra.mxu0 %v1512_v6  ;;  %v1547_v26 = vsub.f32 %v167_v13, %v1527_v18  ;;  %v160_v51 = vld [vmem:[#allocation2 + $0x20] sm:$0xff]  ;;  %v159_v57 = vld [vmem:[#allocation2 + $0x18] sm:$0xff]  ;;  %v158_v63 = vld [vmem:[#allocation2 + $0x10] sm:$0xff]  ;;  %s149_s14 = scalar_lea.vmem [#allocation5], %s942_s7 }
  0x2a   : > { %v173_v2 = vld [vmem:[%s153_s5] sm:$0xff]  ;;  %v296_v25 = vand.u32 4294901760, %v1524_v17  ;;  %v303_v27 = vand.u32 4294901760, %v1532_v20  ;;  %v310_v28 = vand.u32 4294901760, %v1535_v21  ;;  %1057 = vmatprep.subr.mxu0 %v1419_v1  ;;  %v1553_v29 = vsub.f32 %v166_v14, %v1529_v19  ;;  %v157_v8 = vld [vmem:[#allocation2 + $0x8] sm:$0xff]  ;;  %s865_s16 = sshll.u32 %s149_s14, 4  ;;  %s863_s22 = scalar_lea.hbm %s1903_s2, %s948_s8  ;;  %s866_s16 = int_to_ptr.vmem [resolvable:$true] %s865_s16 }
  0x2b   : > { %176 = vperm.xlu0 %1318, %v173_v2   ;;  %v290_v30 = vsub.f32 %v1521_v16, %v289_v24  ;;  %v317_v32 = vand.u32 4294901760, %v1538_v22  ;;  %1058 = vmatpush3.msra.mxu0 %v1514_v10  ;;  %v324_v34 = vand.u32 4294901760, %v1547_v26  ;;  %v1569_v35 = vsub.f32 %v165_v15, %v1541_v23  ;;  %s852_s23 = scalar_lea.sflag [#allocation4], %s147_s6  ;;  %s1349_s24 = scalar_lea.vmem %s866_s16, 128 }
  0x2c   : > { %v297_v31 = vsub.f32 %v1524_v17, %v296_v25  ;;  %v304_v33 = vsub.f32 %v1532_v20, %v303_v27  ;;  %1059 = vmatprep.subr.mxu0 %v1419_v1  ;;  %v311_v40 = vsub.f32 %v1535_v21, %v310_v28  ;;  %v331_v42 = vand.u32 4294901760, %v1553_v29  ;;  %p1350_p6 = scmp.ne.s32.totalorder %s866_s16, %s1349_s24  ;;  %s1421_s25 = smov [#allocation5]  }
  0x2d   : > { %v291_v38 = vand.u32 4294901760, %v290_v30  ;;  %1060 = vmatpush3.msra.mxu0 %v1516_v11  ;;  %v318_v45 = vsub.f32 %v1538_v22, %v317_v32  ;;  %v1581_v46 = vand.u32 4294901760, %v164_v36  ;;  %v1583_v47 = vand.u32 4294901760, %v163_v37  ;;  %s1353_s26 = sshll.u32 %s1421_s25, 4  ;;  %s1354_s26 = int_to_ptr.vmem [resolvable:$false] %s1353_s26 }
  0x2e   : > { %v298_v39 = vand.u32 4294901760, %v297_v31  ;;  %1061 = vmatprep.subr.mxu0 %v1419_v1  ;;  %v305_v44 = vand.u32 4294901760, %v304_v33  ;;  %v325_v48 = vsub.f32 %v1547_v26, %v324_v34  ;;  %v338_v49 = vand.u32 4294901760, %v1569_v35  ;;  %p1351_p9 = pnand %p1350_p6, %p1475_p5  ;;  %s1355_s13 = scalar_lea.vmem %s1354_s26, 256 }
  0x2f   : > { %1089 = vmatpush3.msra.mxu1 %v291_v38  ;;  %1062 = vmatpush3.msra.mxu0 %v1518_v12  ;;  %v1591_v50 = vand.u32 4294901760, %v162_v41  ;;  %v312_v52 = vand.u32 4294901760, %v311_v40  ;;  %v1594_v53 = vsub.f32 %v164_v36, %v1581_v46  ;;  %v1598_v54 = vsub.f32 %v163_v37, %v1583_v47  ;;  %p1356_p11 = scmp.lt.s32.totalorder %s866_s16, %s1354_s26  ;;  %p1357_p12 = scmp.lt.s32.totalorder %s1355_s13, %s1349_s24 }
  0x30   : > { %1090 = vmatprep.subr.mxu1 %v1419_v1  ;;  %1063 = vmatprep.subr.mxu0 %v1419_v1  ;;  %v1600_v55 = vand.u32 4294901760, %v161_v43  ;;  %v332_v56 = vsub.f32 %v1553_v29, %v331_v42  ;;  %v319_v58 = vand.u32 4294901760, %v318_v45  ;;  %v1612_v61 = vand.u32 4294901760, %v160_v51  ;;  %p1352_p10 = pneg %p1351_p9 }
  0x31   : > { %1091 = vmatpush3.msra.mxu1 %v298_v39  ;;  %1064 = vmatpush3.msra.mxu0 %v1527_v18  ;;  %v345_v59 = vand.u32 4294901760, %v1594_v53  ;;  %v1610_v60 = vsub.f32 %v162_v41, %v1591_v50  ;;  %v339_v62 = vsub.f32 %v1569_v35, %v338_v49  ;;  %v326_v0 = vand.u32 4294901760, %v325_v48  ;;  %p1358_p13 = por %p1357_p12, %p1356_p11 }
  0x32   : > { %1092 = vmatprep.subr.mxu1 %v1419_v1  ;;  %1065 = vmatprep.subr.mxu0 %v1419_v1  ;;  %v352_v2 = vand.u32 4294901760, %v1598_v54  ;;  %v1622_v3 = vsub.f32 %v161_v43, %v1600_v55  ;;  %v1624_v4 = vand.u32 4294901760, %v159_v57  ;;  %v333_v7 = vand.u32 4294901760, %v332_v56 }
  0x33   : > { %1093 = vmatpush3.msra.mxu1 %v305_v44  ;;  %1066 = vmatpush3.msra.mxu0 %v1529_v19  ;;  %v346_v9 = vsub.f32 %v1594_v53, %v345_v59  ;;  %v359_v13 = vand.u32 4294901760, %v1610_v60  ;;  %v1634_v14 = vsub.f32 %v160_v51, %v1612_v61  ;;  %v1636_v15 = vand.u32 4294901760, %v158_v63  ;;  %p1359_p0 = pnand %p1358_p13, %p1352_p10 }
  0x34   : > { %1094 = vmatprep.subr.mxu1 %v1419_v1  ;;  %1067 = vmatprep.subr.mxu0 %v1419_v1  ;;  %v340_v30 = vand.u32 4294901760, %v339_v62  ;;  %v353_v31 = vsub.f32 %v1598_v54, %v352_v2  ;;  %v366_v33 = vand.u32 4294901760, %v1622_v3  ;;  %v1646_v36 = vsub.f32 %v159_v57, %v1624_v4 }
  0x35   : > { %1095 = vmatpush3.msra.mxu1 %v312_v52  ;;  %1068 = vmatpush3.msra.mxu0 %v1541_v23  ;;  %v1648_v37 = vand.u32 4294901760, %v157_v8  ;;  %v347_v38 = vand.u32 4294901760, %v346_v9  ;;  %v360_v39 = vsub.f32 %v1610_v60, %v359_v13  ;;  %v373_v40 = vand.u32 4294901760, %v1634_v14 }
  0x36   : > { %1096 = vmatprep.subr.mxu1 %v1419_v1  ;;  %1069 = vmatprep.subr.mxu0 %v1419_v1  ;;  %v1658_v41 = vsub.f32 %v158_v63, %v1636_v15  ;;  %v354_v43 = vand.u32 4294901760, %v353_v31  ;;  %v367_v44 = vsub.f32 %v1622_v3, %v366_v33  ;;  %v380_v45 = vand.u32 4294901760, %v1646_v36  ;;  %v944_v31 = vld [vmem:[#allocation2] ss:$0 sm:$0xff] }
  0x37   : > { %1097 = vmatpush3.msra.mxu1 %v319_v58  ;;  %1070 = vmatpush3.msra.mxu0 %v1581_v46  ;;  %v1668_v48 = vsub.f32 %v157_v8, %v1648_v37  ;;  %v361_v51 = vand.u32 4294901760, %v360_v39  ;;  %v374_v52 = vsub.f32 %v1634_v14, %v373_v40  ;;  %v945_v39 = vld [vmem:[#allocation2 + $0x1] ss:$0 sm:$0xff] }
  0x38   : > { %1098 = vmatprep.subr.mxu1 %v1419_v1  ;;  %1071 = vmatprep.subr.mxu0 %v1419_v1  ;;  %v387_v56 = vand.u32 4294901760, %v1658_v41  ;;  %v368_v57 = vand.u32 4294901760, %v367_v44  ;;  %v381_v58 = vsub.f32 %v1646_v36, %v380_v45 }
  0x39   : > { %1099 = vmatpush3.msra.mxu1 %v326_v0  ;;  %1072 = vmatpush3.msra.mxu0 %v1583_v47  ;;  %v394_v62 = vand.u32 4294901760, %v1668_v48  ;;  %v375_v63 = vand.u32 4294901760, %v374_v52 }
  0x3a   : > { %1100 = vmatprep.subr.mxu1 %v1419_v1  ;;  %1073 = vmatprep.subr.mxu0 %v1419_v1  ;;  %v388_v0 = vsub.f32 %v1658_v41, %v387_v56 }
  0x3b   : > { %1101 = vmatpush3.msra.mxu1 %v333_v7  ;;  %1074 = vmatpush3.msra.mxu0 %v1591_v50  ;;  %v382_v7 = vand.u32 4294901760, %v381_v58  ;;  %v395_v8 = vsub.f32 %v1668_v48, %v394_v62 }
  0x3c   : > { %1102 = vmatprep.subr.mxu1 %v1419_v1  ;;  %1075 = vmatprep.subr.mxu0 %v1419_v1  ;;  %v389_v9 = vand.u32 4294901760, %v388_v0 }
  0x3d   : > { %1103 = vmatpush3.msra.mxu1 %v340_v30  ;;  %1076 = vmatpush3.msra.mxu0 %v1600_v55  ;;  %v396_v30 = vand.u32 4294901760, %v395_v8 }
  0x3e   : > { %1104 = vmatprep.subr.mxu1 %v1419_v1  ;;  %1077 = vmatprep.subr.mxu0 %v1419_v1 }
  0x3f   : > { %1105 = vmatpush3.msra.mxu1 %v347_v38  ;;  %1078 = vmatpush3.msra.mxu0 %v1612_v61 }
  0x40   : > { %1106 = vmatprep.subr.mxu1 %v1419_v1  ;;  %1079 = vmatprep.subr.mxu0 %v1419_v1 }
  0x41   : > { %1107 = vmatpush3.msra.mxu1 %v354_v43  ;;  %1080 = vmatpush3.msra.mxu0 %v1624_v4 }
  0x42   : > { %1108 = vmatprep.subr.mxu1 %v1419_v1  ;;  %1081 = vmatprep.subr.mxu0 %v1419_v1 }
  0x43   : > { %1109 = vmatpush3.msra.mxu1 %v361_v51  ;;  %1082 = vmatpush3.msra.mxu0 %v1636_v15 }
  0x44   : > { %1110 = vmatprep.subr.mxu1 %v1419_v1  ;;  %1083 = vmatprep.subr.mxu0 %v1419_v1 }
  0x45   : > { %1111 = vmatpush3.msra.mxu1 %v368_v57  ;;  %1084 = vmatpush3.msra.mxu0 %v1648_v37 }
  0x46   : > { %1112 = vmatprep.subr.mxu1 %v1419_v1  ;;  %1123 = vmatprep.subr.mxu0 %v1419_v1 }
  0x47   : > { %1113 = vmatpush3.msra.mxu1 %v375_v63 }
  0x48   : > { %1114 = vmatprep.subr.mxu1 %v1419_v1 }
  0x49   : > { %1115 = vmatpush3.msra.mxu1 %v382_v7 }
  0x4a   : > { %1116 = vmatprep.subr.mxu1 %v1419_v1 }
  0x4b   : > { %1117 = vmatpush3.msra.mxu1 %v389_v9 }
  0x4c   : > { %1118 = vmatprep.subr.mxu1 %v1419_v1 }
  0x4d   : > { %1119 = vmatpush3.msra.mxu1 %v396_v30 }
  0x4e   : > { %1158 = vmatprep.subr.mxu1 %v1419_v1 }
  0xa6   : > { %v177_v38 = vpop.permute.xlu0 %176 }
  0xa7   : > { %v183_v43 = vmul.f32 %v944_v31, %v177_v38 }
  0xa9   : > { %v188_v44 = vadd.f32 %v945_v39, %v183_v43 }
  0xab   : > { %v189_v51 = vmax.f32 %v188_v44, 1000.0 }
  0xad   : > { %v190_v52 = vmin.f32 %v189_v51, 10000.0 }
  0xaf   : > { %v1706_v57 = vand.u32 4294901760, %v190_v52 }
  0xb1   : > { %v1709_v58 = vsub.f32 %v190_v52, %v1706_v57  ;;  %1121 = vmatmul.mubr.f32.vlgmr.msra.gmra.mxu1 %v1706_v57 }
  0xb2   : > { %1159 = vmatpush3.msra.mxu1 %v1510_v5  ;;  %1190 = vmatprep.mubr.msk.f32.mxu1 %vm1420_vm0, %v1419_v1 }
  0xb3   : > { %1160 = vmatprep.subr.mxu1 %v1419_v1  ;;  %v278_v63 = vand.u32 4294901760, %v1709_v58 }
  0xb4   : > { %1161 = vmatpush3.msra.mxu1 %v1512_v6 }
  0xb5   : > { %1162 = vmatprep.subr.mxu1 %v1419_v1  ;;  %v279_v0 = vsub.f32 %v1709_v58, %v278_v63 }
  0xb6   : > { %1163 = vmatpush3.msra.mxu1 %v1514_v10 }
  0xb7   : > { %1164 = vmatprep.subr.mxu1 %v1419_v1  ;;  %v280_v7 = vand.u32 4294901760, %v279_v0 }
  0xb8   : > { %1165 = vmatpush3.msra.mxu1 %v1516_v11 }
  0xb9   : > { %1166 = vmatprep.subr.mxu1 %v1419_v1  ;;  %1086 = vmatmul.mubr.f32.vlgmr.msra.gmra.mxu0 %v280_v7 }
  0xba   : > { %1124 = vmatpush3.msra.mxu0 %v1521_v16  ;;  %1167 = vmatpush3.msra.mxu1 %v1518_v12 }
  0xbb   : > { %1125 = vmatprep.subr.mxu0 %v1419_v1  ;;  %1168 = vmatprep.subr.mxu1 %v1419_v1 }
  0xbc   : > { %1126 = vmatpush3.msra.mxu0 %v1524_v17  ;;  %1169 = vmatpush3.msra.mxu1 %v1527_v18 }
  0xbd   : > { %1127 = vmatprep.subr.mxu0 %v1419_v1  ;;  %1170 = vmatprep.subr.mxu1 %v1419_v1 }
  0xbe   : > { %1128 = vmatpush3.msra.mxu0 %v1532_v20  ;;  %1171 = vmatpush3.msra.mxu1 %v1529_v19 }
  0xbf   : > { %1129 = vmatprep.subr.mxu0 %v1419_v1  ;;  %1172 = vmatprep.subr.mxu1 %v1419_v1 }
  0xc0   : > { %1130 = vmatpush3.msra.mxu0 %v1535_v21  ;;  %1173 = vmatpush3.msra.mxu1 %v1541_v23 }
  0xc1   : > { %1131 = vmatprep.subr.mxu0 %v1419_v1  ;;  %1174 = vmatprep.subr.mxu1 %v1419_v1 }
  0xc2   : > { %1132 = vmatpush3.msra.mxu0 %v1538_v22  ;;  %1175 = vmatpush3.msra.mxu1 %v1581_v46 }
  0xc3   : > { %1133 = vmatprep.subr.mxu0 %v1419_v1  ;;  %1176 = vmatprep.subr.mxu1 %v1419_v1 }
  0xc4   : > { %1134 = vmatpush3.msra.mxu0 %v1547_v26  ;;  %1177 = vmatpush3.msra.mxu1 %v1583_v47 }
  0xc5   : > { %1135 = vmatprep.subr.mxu0 %v1419_v1  ;;  %1178 = vmatprep.subr.mxu1 %v1419_v1 }
  0xc6   : > { %1136 = vmatpush3.msra.mxu0 %v1553_v29  ;;  %1179 = vmatpush3.msra.mxu1 %v1591_v50 }
  0xc7   : > { %1137 = vmatprep.subr.mxu0 %v1419_v1  ;;  %1180 = vmatprep.subr.mxu1 %v1419_v1 }
  0xc8   : > { %1138 = vmatpush3.msra.mxu0 %v1569_v35  ;;  %1181 = vmatpush3.msra.mxu1 %v1600_v55 }
  0xc9   : > { %1139 = vmatprep.subr.mxu0 %v1419_v1  ;;  %1182 = vmatprep.subr.mxu1 %v1419_v1 }
  0xca   : > { %1140 = vmatpush3.msra.mxu0 %v1594_v53  ;;  %1183 = vmatpush3.msra.mxu1 %v1612_v61 }
  0xcb   : > { %1141 = vmatprep.subr.mxu0 %v1419_v1  ;;  %1184 = vmatprep.subr.mxu1 %v1419_v1 }
  0xcc   : > { %1142 = vmatpush3.msra.mxu0 %v1598_v54  ;;  %1185 = vmatpush3.msra.mxu1 %v1624_v4 }
  0xcd   : > { %1143 = vmatprep.subr.mxu0 %v1419_v1  ;;  %1186 = vmatprep.subr.mxu1 %v1419_v1 }
  0xce   : > { %1144 = vmatpush3.msra.mxu0 %v1610_v60  ;;  %1187 = vmatpush3.msra.mxu1 %v1636_v15 }
  0xcf   : > { %1145 = vmatprep.subr.mxu0 %v1419_v1  ;;  %1188 = vmatprep.subr.mxu1 %v1419_v1 }
  0xd0   : > { %1146 = vmatpush3.msra.mxu0 %v1622_v3  ;;  %1189 = vmatpush3.msra.mxu1 %v1648_v37 }
  0xd1   : > { %1147 = vmatprep.subr.mxu0 %v1419_v1  ;;  %1191 = vmatmul.mubr.f32.vlgmr.msra.gmra.mxu1 %v278_v63 }
  0xd2   : > { %1228 = vmatprep.subr.mxu1 %v1419_v1  ;;  %1148 = vmatpush3.msra.mxu0 %v1634_v14 }
  0xd3   : > { %1229 = vmatpush3.msra.mxu1 %v1510_v5  ;;  %1149 = vmatprep.subr.mxu0 %v1419_v1 }
  0xd4   : > { %1230 = vmatprep.subr.mxu1 %v1419_v1  ;;  %1150 = vmatpush3.msra.mxu0 %v1646_v36 }
  0xd5   : > { %1231 = vmatpush3.msra.mxu1 %v1512_v6  ;;  %1151 = vmatprep.subr.mxu0 %v1419_v1 }
  0xd6   : > { %1232 = vmatprep.subr.mxu1 %v1419_v1  ;;  %1152 = vmatpush3.msra.mxu0 %v1658_v41 }
  0xd7   : > { %1233 = vmatpush3.msra.mxu1 %v1514_v10  ;;  %1153 = vmatprep.subr.mxu0 %v1419_v1 }
  0xd8   : > { %1234 = vmatprep.subr.mxu1 %v1419_v1  ;;  %1154 = vmatpush3.msra.mxu0 %v1668_v48 }
  0xd9   : > { %1155 = vmatprep.mubr.msk.f32.mxu0 %vm1420_vm0, %v1419_v1  ;;  %1235 = vmatpush3.msra.mxu1 %v1516_v11 }
  0xda   : > { %1156 = vmatmul.mubr.f32.vlgmr.msra.gmra.mxu0 %v1709_v58  ;;  %1193 = vmatprep.subr.mxu0 %v1419_v1 }
  0xdb   : > { %1236 = vmatprep.subr.mxu1 %v1419_v1  ;;  %1194 = vmatpush3.msra.mxu0 %v289_v24 }
  0xdc   : > { %1237 = vmatpush3.msra.mxu1 %v1518_v12  ;;  %1195 = vmatprep.subr.mxu0 %v1419_v1 }
  0xdd   : > { %1238 = vmatprep.subr.mxu1 %v1419_v1  ;;  %1196 = vmatpush3.msra.mxu0 %v296_v25 }
  0xde   : > { %1239 = vmatpush3.msra.mxu1 %v1527_v18  ;;  %1197 = vmatprep.subr.mxu0 %v1419_v1 }
  0xdf   : > { %1240 = vmatprep.subr.mxu1 %v1419_v1  ;;  %1198 = vmatpush3.msra.mxu0 %v303_v27 }
  0xe0   : > { %1241 = vmatpush3.msra.mxu1 %v1529_v19  ;;  %1199 = vmatprep.subr.mxu0 %v1419_v1  ;;  %v946_v19 = vld [vmem:[#allocation2 + $0x2] ss:$0 sm:$0xff] }
  0xe1   : > { %1242 = vmatprep.subr.mxu1 %v1419_v1  ;;  %1200 = vmatpush3.msra.mxu0 %v310_v28 }
  0xe2   : > { %1243 = vmatpush3.msra.mxu1 %v1541_v23  ;;  %1201 = vmatprep.subr.mxu0 %v1419_v1 }
  0xe3   : > { %1244 = vmatprep.subr.mxu1 %v1419_v1  ;;  %1202 = vmatpush3.msra.mxu0 %v317_v32 }
  0xe4   : > { %1245 = vmatpush3.msra.mxu1 %v1581_v46  ;;  %1203 = vmatprep.subr.mxu0 %v1419_v1 }
  0xe5   : > { %1246 = vmatprep.subr.mxu1 %v1419_v1  ;;  %1204 = vmatpush3.msra.mxu0 %v324_v34 }
  0xe6   : > { %1247 = vmatpush3.msra.mxu1 %v1583_v47  ;;  %1205 = vmatprep.subr.mxu0 %v1419_v1 }
  0xe7   : > { %1248 = vmatprep.subr.mxu1 %v1419_v1  ;;  %1206 = vmatpush3.msra.mxu0 %v331_v42  ;;  %v837_v42 = vlaneseq }
  0xe8   : > { %1249 = vmatpush3.msra.mxu1 %v1591_v50  ;;  %1207 = vmatprep.subr.mxu0 %v1419_v1 }
  0xe9   : > { %1250 = vmatprep.subr.mxu1 %v1419_v1  ;;  %1208 = vmatpush3.msra.mxu0 %v338_v49  ;;  %v838_v46 = vand.u32 127, %v837_v42 }
  0xea   : > { %1251 = vmatpush3.msra.mxu1 %v1600_v55  ;;  %1209 = vmatprep.subr.mxu0 %v1419_v1 }
  0xeb   : > { %1252 = vmatprep.subr.mxu1 %v1419_v1  ;;  %1210 = vmatpush3.msra.mxu0 %v345_v59  ;;  %vm841_vm1 = vcmp.lt.s32.totalorder %v838_v46, 10 }
  0xec   : > { %1253 = vmatpush3.msra.mxu1 %v1612_v61  ;;  %1211 = vmatprep.subr.mxu0 %v1419_v1 }
  0xed   : > { %1254 = vmatprep.subr.mxu1 %v1419_v1  ;;  %1212 = vmatpush3.msra.mxu0 %v352_v2 }
  0xee   : > { %1255 = vmatpush3.msra.mxu1 %v1624_v4  ;;  %1213 = vmatprep.subr.mxu0 %v1419_v1 }
  0xef   : > { %1256 = vmatprep.subr.mxu1 %v1419_v1  ;;  %1214 = vmatpush3.msra.mxu0 %v359_v13 }
  0xf0   : > { %1257 = vmatpush3.msra.mxu1 %v1636_v15  ;;  %1215 = vmatprep.subr.mxu0 %v1419_v1 }
  0xf1   : > { %1258 = vmatprep.subr.mxu1 %v1419_v1  ;;  %1216 = vmatpush3.msra.mxu0 %v366_v33 }
  0xf2   : > { %1259 = vmatpush3.msra.mxu1 %v1648_v37  ;;  %1260 = vmatprep.mubr.msk.f32.mxu1 %vm1420_vm0, %v1419_v1 }
  0xf3   : > { %1217 = vmatprep.subr.mxu0 %v1419_v1  ;;  %1261 = vmatmul.mubr.f32.vlgmr.msra.gmra.mxu1 %v1706_v57 }
  0xf4   : > { %1218 = vmatpush3.msra.mxu0 %v373_v40  ;;  %1225 = vmatprep.mubr.msk.f32.mxu0 %vm1420_vm0, %v1419_v1 }
  0xf5   : > { %1219 = vmatprep.subr.mxu0 %v1419_v1 }
  0xf6   : > { %1220 = vmatpush3.msra.mxu0 %v380_v45 }
  0xf7   : > { %1221 = vmatprep.subr.mxu0 %v1419_v1 }
  0xf8   : > { %1222 = vmatpush3.msra.mxu0 %v387_v56 }
  0xf9   : > { %1223 = vmatprep.subr.mxu0 %v1419_v1 }
  0xfa   : > { %1224 = vmatpush3.msra.mxu0 %v394_v62 }
  0xfb   : > { %1226 = vmatmul.mubr.f32.vlgmr.msra.gmra.mxu0 %v1706_v57 }
 0x171   : > { %v433_v5 = vpop.f32.mrf.mxu1 }
 0x173   : > { %v1122_v6 = vpop.f32.mrf.mxu1 }
 0x179   : > { %v282_v10 = vpop.f32.mrf.mxu0 }
 0x17a   : > { %v283_v20 = vadd.f32 %v946_v19, %v282_v10 }
 0x17b   : > { %v1087_v11 = vpop.f32.mrf.mxu0 }
 0x17c   : > { %v434_v22 = vadd.f32 %v433_v5, %v283_v20 }
 0x191   : > { %v626_v12 = vpop.f32.mrf.mxu1 }
 0x193   : > { %v1192_v16 = vpop.f32.mrf.mxu1 }
 0x19a   : > { %v537_v17 = vpop.f32.mrf.mxu0 }
 0x19b   : > { %v538_v24 = vadd.f32 %v537_v17, %v434_v22 }
 0x19c   : > { %v1157_v18 = vpop.f32.mrf.mxu0 }
 0x19d   : > { %v627_v1 = vadd.f32 %v626_v12, %v538_v24 }
 0x1b3   : > { %v832_v21 = vpop.f32.mrf.mxu1 }
 0x1b5   : > { %v1262_v23 = vpop.f32.mrf.mxu1 }
 0x1bb   : > { %v745_v25 = vpop.f32.mrf.mxu0 }
 0x1bc   : > { %v746_v26 = vadd.f32 %v745_v25, %v627_v1 }
 0x1bd   : > { %v1227_v27 = vpop.f32.mrf.mxu0 }
 0x1be   : > { %v833_v28 = vadd.f32 %v832_v21, %v746_v26 }
 0x1c0   : > { %v836_v29 = vmax.f32 %v833_v28, 0.0 }
 0x1c2   : > { %839 = vmax.xlane.f32.xlu0 %v836_v29 }
 0x24b   : > { %v840_v32 = vpop.xlane.xlu0 %839 }
 0x24c   : > { %v842_v34 = vsub.f32 %v836_v29, %v840_v32 }
 0x24e   : > { %v843_v35 = vmul.f32 1.442695, %v842_v34 }
 0x250   : > { %1319 = vpow2.f32 %v843_v35 }
 0x25d   : > { %v1320_v47 = vpop.eup %1319 }
 0x25e   : > { %v845_v49 = vsel %vm841_vm1, %v1320_v47, 0.0 }
 0x25f   : > { %846 = vadd.xlane.f32.xlu1 %v845_v49 }
 0x2e8   : > { %v847_v50 = vpop.xlane.xlu1 %846 }
 0x2e9   : > { %1321 = vrcp.f32 %v847_v50 }
 0x2f6   : > { %v1322_v53 = vpop.eup %1321 }
 0x2f7   : > { %v849_v54 = vmul.f32 %v1322_v53, %v845_v49 }
 0x2f9   : > { %850 = vst [vmem:[%s149_s14] sm:$0xff] %v849_v54 }
 0x2fa   : > { %1362 = shalt.err (!%p1359_p0)
}
 0x2fb   : > { %s1363_s27 = scalar_lea.hbm %s863_s22, 128  ;;  %s1367_s30 = scalar_lea.hbm %s1903_s2, 256 }
 0x2fc   : > { %p1364_p1 = scmp.ne.s32.totalorder %s863_s22, %s1363_s27  ;;  %p1368_p4 = scmp.lt.s32.totalorder %s863_s22, %s1903_s2 }
 0x2fd   : > { %p1369_p7 = scmp.lt.s32.totalorder %s1367_s30, %s1363_s27 }
 0x2fe   : > { %p1365_p2 = pnand %p1364_p1, %p1475_p5 }
 0x2ff   : > { %p1370_p8 = por %p1369_p7, %p1368_p4 }
 0x300   : > { %p1366_p3 = pneg %p1365_p2 }
 0x302   : > { %p1371_p6 = pnand %p1370_p8, %p1366_p3 }
 0x304   : > { %1374 = shalt.err (!%p1371_p6)
}
 0x305   : > { %1267 = dma.vmem_to_hbm [thread:$0]  (%p1475_p5), %s866_s16, 128, %s863_s22, %s852_s23  }
 0x306 PF: > { %p1279_p9 = scmp.ge.s32.totalorder %s1413_s12, 2  ;;  %s877_s5 = sand.u32 1, %s1401_s9  }
 0x307   : > { %p1907_p10 = scmp.ne.s32.totalorder %s1905_s20, 0  ;;  %s878_s6 = scalar_lea.sflag [#allocation4], %s877_s5 }
 0x309   : > { %p1274_p11 = pnand %p1279_p9, %p1907_p10 }
 0x30b   : > { %p1275_p12 = pneg %p1274_p11 }
 0x30d   : > { %1396 = dma.done.wait (%p1275_p12), %s878_s6, 128  }
 0x30e   : > { %1398 = vsyncadd (%p1275_p12), %s878_s6, 4294967168  ;;  %p13_p13 = scmp.ge.s32.totalorder %s1462_s15, 4   ;;  %s1908_s9 = smov %s1405_s10 }
 0x30f   : > { %s1909_s10 = smov %s1409_s11  ;;  %s1910_s11 = smov %s1473_s18 }
 0x310   : > { %s1911_s12 = smov %s1462_s15  ;;  %15 = sbr.rel (!%p13_p13) target bundleno = 4 (0x4), region = 68 }
 0x315   :  { %883 = vsyncpa [#allocation3], 1 }
 0x316   :  { %885 = vsyncpa [#allocation3 + $0x1], 1 }
 0x317   :  { %886 = vsyncpa [#allocation4], 1 }
 0x318   :  { %888 = vsyncpa [#allocation4 + $0x1], 1 }

</bundles_post_ra>
